<compile_context>
chip_gen: v5e
topology: v5e:2x2
jax: 0.10.0
libtpu: 0.0.40
codegen_flags: <defaults>
</compile_context>

<pallas_src>
import functools

import jax
import jax.numpy as jnp
import numpy as np
from jax.experimental import pallas as pl
from jax.experimental.pallas import tpu as pltpu


_SQRT_2_OVER_PI = 0.7978845608028654


def _gelu_tanh(x):
    # tanh-approximation GeLU; tanh lowers to the EUP slot (free under MXU).
    # TODO(synk): torch nn.GELU default (and possibly HMQGeLU) is the exact erf
    # form 0.5*x*(1+erf(x/sqrt(2))); swap in if bit-exact erf parity is needed.
    return 0.5 * x * (1.0 + jnp.tanh(_SQRT_2_OVER_PI * (x + 0.044715 * x * x * x)))


def bert_intermediate_kernel(x_ref, w_ref, b_ref, o_ref):
    # x_ref: (tm, H) bf16, w_ref: (tn, H) bf16 (torch layout), b_ref: (1, tn) f32
    acc = jax.lax.dot_general(
        x_ref[...], w_ref[...],
        dimension_numbers=(((1,), (1,)), ((), ())),   # x @ w^T on the MXU
        preferred_element_type=jnp.float32)
    y = acc + b_ref[...]                              # bias broadcast over rows
    o_ref[...] = _gelu_tanh(y).astype(o_ref.dtype)


def _round_up(x, m):
    return ((x + m - 1) // m) * m


def _pick_tile(dim, pref, align):
    """Largest multiple of `align` <= pref that divides dim, else full dim."""
    if dim <= pref:
        return dim
    t = (pref // align) * align
    while t >= align:
        if dim % t == 0:
            return t
        t -= align
    return dim


@functools.partial(jax.jit, static_argnames=("tm", "tn"))
def bert_intermediate(hidden_states, weight, bias, *, tm=256, tn=512):
    """Fused Linear + GeLU.

    hidden_states: (B, S, H)
    weight:        (I, H)   torch nn.Linear layout (out_features, in_features)
    bias:          (I,)
    returns:       (B, S, I) in hidden_states.dtype
    """
    B, S, H = hidden_states.shape
    I = weight.shape[0]
    M = B * S
    out_dtype = hidden_states.dtype

    # bf16 MXU inputs, f32 accumulation inside the kernel.
    x2 = hidden_states.reshape(M, H).astype(jnp.bfloat16)
    w = weight.astype(jnp.bfloat16)                  # keep (I, H) — no transpose
    b2 = bias.reshape(1, I).astype(jnp.float32)

    # Tile selection. K axis is collapsed (tk = H): BERT-sized H is VMEM-resident.
    tm = min(tm, _round_up(M, 8))
    tn = _pick_tile(I, tn, 128)

    # Pad rows so M divides tm (ragged B*S); padded rows are discarded below.
    Mp = _round_up(M, tm)
    if Mp != M:
        x2 = jnp.pad(x2, ((0, Mp - M), (0, 0)))

    grid = (Mp // tm, I // tn)   # j inner -> x tile stays resident across j

    # VMEM budget: double-buffered x/w/bias tiles + output tile, with headroom.
    out_bytes = jnp.dtype(out_dtype).itemsize
    footprint = 2 * (tm * H * 2 + tn * H * 2 + tn * 4 + tm * tn * out_bytes)
    vmem_limit = int(min(max(footprint * 3 // 2 + (1 << 20), 32 * 1024 * 1024),
                         48 * 1024 * 1024))

    out = pl.pallas_call(
        bert_intermediate_kernel,
        out_shape=jax.ShapeDtypeStruct((Mp, I), out_dtype),
        grid_spec=pltpu.PrefetchScalarGridSpec(
            num_scalar_prefetch=0,
            grid=grid,
            in_specs=[
                pl.BlockSpec((tm, H), lambda i, j: (i, 0)),   # activations
                pl.BlockSpec((tn, H), lambda i, j: (j, 0)),   # weight (torch layout)
                pl.BlockSpec((1, tn), lambda i, j: (0, j)),   # bias
            ],
            out_specs=pl.BlockSpec((tm, tn), lambda i, j: (i, j)),
        ),
        compiler_params=pltpu.CompilerParams(
            dimension_semantics=("parallel", "parallel"),
            vmem_limit_bytes=vmem_limit),
    )(x2, w, b2)

    if Mp != M:
        out = out[:M]
    return out.reshape(B, S, I)


def reference_bert_intermediate(hidden_states, weight, bias):
    # Mirrors the kernel's numerics: bf16 inputs, f32 accumulation, f32 epilogue.
    x = hidden_states.astype(jnp.bfloat16)
    w = weight.astype(jnp.bfloat16)
    y = jnp.einsum("bsh,ih->bsi", x, w,
                   preferred_element_type=jnp.float32) + bias.astype(jnp.float32)
    return _gelu_tanh(y).astype(hidden_states.dtype)


if __name__ == "__main__":
    # Small config consistent with BertIntermediate: hidden_size -> intermediate_size.
    B, S = 2, 8
    hidden_size = 128
    intermediate_size = 512

    key = jax.random.PRNGKey(0)
    k_x, k_w, k_b = jax.random.split(key, 3)

    hidden_states = jax.random.normal(k_x, (B, S, hidden_size), jnp.float32)
    # torch nn.Linear layout: weight (out_features, in_features), bias (out_features,)
    weight = (jax.random.normal(k_w, (intermediate_size, hidden_size), jnp.float32)
              / np.sqrt(hidden_size))
    bias = 0.1 * jax.random.normal(k_b, (intermediate_size,), jnp.float32)

    # TODO(synk): HMQAct / HMQLinear quantization observers & calibration (and the
    # ModelParser / C_dict bookkeeping args) have no Pallas equivalent; in the fp
    # forward path they are identity, so the kernel implements Linear + GeLU only.
    out = bert_intermediate(hidden_states, weight, bias)
    out = jax.block_until_ready(out)

    ref = reference_bert_intermediate(hidden_states, weight, bias)
    np.testing.assert_allclose(np.asarray(out), np.asarray(ref),
                               rtol=1e-4, atol=1e-4)
    print("KERNEL_OK")
</pallas_src>

<mosaic_0001>
module attributes {stable_mosaic.version = 11 : i64} {
  func.func @bert_intermediate_kernel(%arg0: i32, %arg1: i32, %arg2: memref<16x128xbf16, #tpu.memory_space<vmem>>, %arg3: memref<512x128xbf16, #tpu.memory_space<vmem>>, %arg4: memref<1x512xf32, #tpu.memory_space<vmem>>, %arg5: memref<16x512xf32, #tpu.memory_space<vmem>>) attributes {dimension_semantics = [#tpu.dimension_semantics<parallel>, #tpu.dimension_semantics<parallel>], iteration_bounds = array<i64: 1, 1>, scalar_prefetch = 0 : i64, scratch_operands = 0 : i64, tpu.core_type = #tpu.core_type<tc>, window_params = [{transform_indices = @transform_0, window_bounds = array<i64: 16, 128>}, {transform_indices = @transform_1, window_bounds = array<i64: 512, 128>}, {transform_indices = @transform_2, window_bounds = array<i64: 1, 512>}, {transform_indices = @transform_3, window_bounds = array<i64: 16, 512>}]} {
    %c0 = arith.constant 0 : index
    %c0_0 = arith.constant 0 : index
    %0 = vector.load %arg2[%c0, %c0_0] : memref<16x128xbf16, #tpu.memory_space<vmem>>, vector<16x128xbf16>
    %c0_1 = arith.constant 0 : index
    %c0_2 = arith.constant 0 : index
    %1 = vector.load %arg3[%c0_1, %c0_2] : memref<512x128xbf16, #tpu.memory_space<vmem>>, vector<512x128xbf16>
    %cst = arith.constant dense<0.000000e+00> : vector<16x512xf32>
    %2 = tpu.matmul %0, %1, %cst {dimension_numbers = #tpu.dot_dimension_numbers<[1], [1], [0], [0], [0, 0, 1, 0], [], []>} : vector<16x128xbf16>, vector<512x128xbf16>, vector<16x512xf32> -> vector<16x512xf32>
    %c0_3 = arith.constant 0 : index
    %c0_4 = arith.constant 0 : index
    %3 = vector.load %arg4[%c0_3, %c0_4] : memref<1x512xf32, #tpu.memory_space<vmem>>, vector<1x512xf32>
    %4 = vector.broadcast %3 : vector<1x512xf32> to vector<16x512xf32>
    %5 = arith.addf %2, %4 : vector<16x512xf32>
    %cst_5 = arith.constant 5.000000e-01 : f32
    %6 = vector.broadcast %cst_5 : f32 to vector<16x512xf32>
    %7 = arith.mulf %6, %5 : vector<16x512xf32>
    %cst_6 = arith.constant 4.471500e-02 : f32
    %8 = vector.broadcast %cst_6 : f32 to vector<16x512xf32>
    %9 = arith.mulf %8, %5 : vector<16x512xf32>
    %10 = arith.mulf %9, %5 : vector<16x512xf32>
    %11 = arith.mulf %10, %5 : vector<16x512xf32>
    %12 = arith.addf %5, %11 : vector<16x512xf32>
    %cst_7 = arith.constant 0.797884583 : f32
    %13 = vector.broadcast %cst_7 : f32 to vector<16x512xf32>
    %14 = arith.mulf %13, %12 : vector<16x512xf32>
    %15 = math.tanh %14 : vector<16x512xf32>
    %cst_8 = arith.constant 1.000000e+00 : f32
    %16 = vector.broadcast %cst_8 : f32 to vector<16x512xf32>
    %17 = arith.addf %16, %15 : vector<16x512xf32>
    %18 = arith.mulf %7, %17 : vector<16x512xf32>
    %c0_9 = arith.constant 0 : index
    %c0_10 = arith.constant 0 : index
    %19 = vector.load %arg5[%c0_9, %c0_10] : memref<16x512xf32, #tpu.memory_space<vmem>>, vector<16x512xf32>
    tpu.vector_store %arg5[%c0_9, %c0_10], %18 {strides = array<i32>} : memref<16x512xf32, #tpu.memory_space<vmem>>, vector<16x512xf32>,
    return
  }
  func.func @transform_0(%arg0: i32, %arg1: i32) -> (i32, i32) {
    %c0_i32 = arith.constant 0 : i32
    %c0_i32_0 = arith.constant 0 : i32
    return %arg0, %c0_i32 : i32, i32
  }
  func.func @transform_1(%arg0: i32, %arg1: i32) -> (i32, i32) {
    %c0_i32 = arith.constant 0 : i32
    %c0_i32_0 = arith.constant 0 : i32
    return %arg1, %c0_i32 : i32, i32
  }
  func.func @transform_2(%arg0: i32, %arg1: i32) -> (i32, i32) {
    %c0_i32 = arith.constant 0 : i32
    %c0_i32_0 = arith.constant 0 : i32
    return %c0_i32, %arg1 : i32, i32
  }
  func.func @transform_3(%arg0: i32, %arg1: i32) -> (i32, i32) {
    %c0_i32 = arith.constant 0 : i32
    return %arg0, %arg1 : i32, i32
  }
}

</mosaic_0001>

<bundles_post_ra>
// kernel: bert_intermediate.1
= control target key start
LH: loop header
LB: loop body
LE: loop exit
PB: predicated region body
PF: predicated region fallthrough
CT: control target
= control target key end

     0   :  { %s795_s0 = inlined_call_operand.vmem [shape: bf16[16,128], index: 0, kind: input, shape index: {}]   ;;  %s796_s1 = inlined_call_operand.vmem [shape: bf16[512,128], index: 1, kind: input, shape index: {}]   ;;  %s797_s2 = inlined_call_operand.vmem [shape: f32[1,512], index: 2, kind: input, shape index: {}]   ;;  %s798_s3 = inlined_call_operand.hbm [shape: f32[16,512], index: 3, kind: output, shape index: {}]  }
   0x1   :  { %v583_v0 = vld [vmem:[%s796_s1 + $0x38] sm:$0xff]  ;;  %v582_v4 = vld [vmem:[%s796_s1 + $0x30] sm:$0xff] }
   0x2   :  { %v591_v1 = vld [vmem:[%s796_s1 + $0x78] sm:$0xff]  ;;  %289 = vmatpush.bf16.xpose.msra.mxu0 %v583_v0  ;;  %v590_v5 = vld [vmem:[%s796_s1 + $0x70] sm:$0xff] }
   0x3   :  { %v599_v2 = vld [vmem:[%s796_s1 + $0xb8] sm:$0xff]  ;;  %303 = vmatpush.bf16.xpose.msra.mxu1 %v591_v1  ;;  %v598_v6 = vld [vmem:[%s796_s1 + $0xb0] sm:$0xff] }
   0x4   :  { %v607_v3 = vld [vmem:[%s796_s1 + $0xf8] sm:$0xff]  ;;  %317 = vmatpush.bf16.xpose.msra.mxu2 %v599_v2  ;;  %v606_v7 = vld [vmem:[%s796_s1 + $0xf0] sm:$0xff] }
   0x5   :  { %331 = vmatpush.bf16.xpose.msra.mxu3 %v607_v3 }
   0x6   :  { %8 = vsyncpa [#allocation3], 0  ;;  %v581_v8 = vld [vmem:[%s796_s1 + $0x28] sm:$0xff]  ;;  %v580_v12 = vld [vmem:[%s796_s1 + $0x20] sm:$0xff]  ;;  %s431_s27 = sshll.u32 %s798_s3, 4  ;;  %s654_s28 = smov 512   ;;  %s432_s27 = int_to_ptr.hbm [resolvable:$true] %s431_s27 }
   0x7   :  { %v589_v9 = vld [vmem:[%s796_s1 + $0x68] sm:$0xff]  ;;  %v588_v13 = vld [vmem:[%s796_s1 + $0x60] sm:$0xff]  ;;  %v579_v16 = vld [vmem:[%s796_s1 + $0x18] sm:$0xff]  ;;  %s655_s29 = smov 32  }
   0x8   :  { %v597_v10 = vld [vmem:[%s796_s1 + $0xa8] sm:$0xff]  ;;  %v596_v14 = vld [vmem:[%s796_s1 + $0xa0] sm:$0xff]  ;;  %v587_v17 = vld [vmem:[%s796_s1 + $0x58] sm:$0xff] }
   0x9   :  { %v605_v11 = vld [vmem:[%s796_s1 + $0xe8] sm:$0xff]  ;;  %v604_v15 = vld [vmem:[%s796_s1 + $0xe0] sm:$0xff]  ;;  %v595_v18 = vld [vmem:[%s796_s1 + $0x98] sm:$0xff] }
   0xa   :  { %290 = vmatpush.bf16.xpose.msra.mxu0 %v582_v4  ;;  %v603_v19 = vld [vmem:[%s796_s1 + $0xd8] sm:$0xff]  ;;  %v578_v20 = vld [vmem:[%s796_s1 + $0x10] sm:$0xff]  ;;  %v577_v24 = vld [vmem:[%s796_s1 + $0x8] sm:$0xff] }
   0xb   :  { %304 = vmatpush.bf16.xpose.msra.mxu1 %v590_v5  ;;  %v586_v21 = vld [vmem:[%s796_s1 + $0x50] sm:$0xff]  ;;  %v585_v25 = vld [vmem:[%s796_s1 + $0x48] sm:$0xff]  ;;  %v576_v28 = vld [vmem:[%s796_s1] sm:$0xff] }
   0xc   :  { %318 = vmatpush.bf16.xpose.msra.mxu2 %v598_v6  ;;  %v594_v22 = vld [vmem:[%s796_s1 + $0x90] sm:$0xff]  ;;  %v593_v26 = vld [vmem:[%s796_s1 + $0x88] sm:$0xff]  ;;  %v584_v29 = vld [vmem:[%s796_s1 + $0x40] sm:$0xff] }
   0xd   :  { %332 = vmatpush.bf16.xpose.msra.mxu3 %v606_v7  ;;  %v602_v23 = vld [vmem:[%s796_s1 + $0xd0] sm:$0xff]  ;;  %v601_v27 = vld [vmem:[%s796_s1 + $0xc8] sm:$0xff]  ;;  %v592_v30 = vld [vmem:[%s796_s1 + $0x80] sm:$0xff] }
   0xe   :  { %v600_v31 = vld [vmem:[%s796_s1 + $0xc0] sm:$0xff] }
   0xf   :  { %v575_v32 = vld [vmem:[%s795_s0] sm:$0xff]  ;;  %s653_s0 = smov [#allocation2]  }
  0x10   :  { %v81_v33 = vld [vmem:[%s797_s2] sm:$0xf]  ;;  %s429_s1 = sshll.u32 %s653_s0, 4  ;;  %s430_s1 = int_to_ptr.vmem [resolvable:$true] %s429_s1 }
  0x11   :  { %v83_v34 = vperm.slane %v81_v33, 0  ;;  %v84_v35 = vperm.slane %v81_v33, 1  ;;  %v85_v42 = vperm.slane %v81_v33, 2  ;;  %v86_v43 = vperm.slane %v81_v33, 3 }
  0x12   :  { %291 = vmatpush.bf16.xpose.msra.mxu0 %v581_v8 }
  0x13   :  { %305 = vmatpush.bf16.xpose.msra.mxu1 %v589_v9 }
  0x14   :  { %319 = vmatpush.bf16.xpose.msra.mxu2 %v597_v10 }
  0x15   :  { %333 = vmatpush.bf16.xpose.msra.mxu3 %v605_v11 }
  0x1a   :  { %292 = vmatpush.bf16.xpose.msra.mxu0 %v580_v12 }
  0x1b   :  { %306 = vmatpush.bf16.xpose.msra.mxu1 %v588_v13 }
  0x1c   :  { %320 = vmatpush.bf16.xpose.msra.mxu2 %v596_v14 }
  0x1d   :  { %334 = vmatpush.bf16.xpose.msra.mxu3 %v604_v15 }
  0x22   :  { %293 = vmatpush.bf16.xpose.msra.mxu0 %v579_v16 }
  0x23   :  { %307 = vmatpush.bf16.xpose.msra.mxu1 %v587_v17 }
  0x24   :  { %321 = vmatpush.bf16.xpose.msra.mxu2 %v595_v18 }
  0x25   :  { %335 = vmatpush.bf16.xpose.msra.mxu3 %v603_v19 }
  0x2a   :  { %294 = vmatpush.bf16.xpose.msra.mxu0 %v578_v20 }
  0x2b   :  { %308 = vmatpush.bf16.xpose.msra.mxu1 %v586_v21 }
  0x2c   :  { %322 = vmatpush.bf16.xpose.msra.mxu2 %v594_v22 }
  0x2d   :  { %336 = vmatpush.bf16.xpose.msra.mxu3 %v602_v23 }
  0x32   :  { %295 = vmatpush.bf16.xpose.msra.mxu0 %v577_v24 }
  0x33   :  { %309 = vmatpush.bf16.xpose.msra.mxu1 %v585_v25 }
  0x34   :  { %323 = vmatpush.bf16.xpose.msra.mxu2 %v593_v26 }
  0x35   :  { %337 = vmatpush.bf16.xpose.msra.mxu3 %v601_v27 }
  0x3a   :  { %296 = vmatpush.bf16.xpose.msra.mxu0 %v576_v28 }
  0x3b   :  { %310 = vmatpush.bf16.xpose.msra.mxu1 %v584_v29 }
  0x3c   :  { %324 = vmatpush.bf16.xpose.msra.mxu2 %v592_v30 }
  0x3d   :  { %338 = vmatpush.bf16.xpose.msra.mxu3 %v600_v31 }
  0x41   :  { %297 = vmatmul.bf16.vlgmr.msra.gmra.mxu0 %v575_v32 }
  0x42   :  { %311 = vmatmul.bf16.vlgmr.msra.gmra.mxu1 %v575_v32 }
  0x43   :  { %325 = vmatmul.bf16.vlgmr.msra.gmra.mxu2 %v575_v32 }
  0x44   :  { %339 = vmatmul.bf16.vlgmr.msra.gmra.mxu3 %v575_v32 }
  0xbe   :  { %v298_v36 = vpop.f32.mrf.mxu0 }
  0xbf   :  { %v312_v37 = vpop.f32.mrf.mxu1  ;;  %v299_v38 = vadd.f32 %v298_v36, %v83_v34 }
  0xc0   :  { %v313_v39 = vadd.f32 %v312_v37, %v84_v35 }
  0xc1   :  { %v353_v40 = vmul.f32 0.044715, %v299_v38  ;;  %v345_v18 = vmul.f32 0.5, %v299_v38 }
  0xc2   :  { %v354_v41 = vmul.f32 0.044715, %v313_v39  ;;  %v346_v24 = vmul.f32 0.5, %v313_v39 }
  0xc3   :  { %v361_v44 = vmul.f32 %v353_v40, %v299_v38 }
  0xc4   :  { %v362_v45 = vmul.f32 %v354_v41, %v313_v39 }
  0xc5   :  { %v369_v46 = vmul.f32 %v361_v44, %v299_v38 }
  0xc6   :  { %v370_v47 = vmul.f32 %v362_v45, %v313_v39  ;;  %v326_v48 = vpop.f32.mrf.mxu2  ;;  %v300_v52 = vpop.f32.mrf.mxu0 }
  0xc7   :  { %v340_v49 = vpop.f32.mrf.mxu3  ;;  %v327_v50 = vadd.f32 %v326_v48, %v85_v42  ;;  %v314_v53 = vpop.f32.mrf.mxu1  ;;  %v377_v54 = vadd.f32 %v369_v46, %v299_v38  ;;  %v778_v56 = vadd.f32 %v300_v52, %v83_v34 }
  0xc8   :  { %v341_v51 = vadd.f32 %v340_v49, %v86_v43  ;;  %v378_v55 = vadd.f32 %v370_v47, %v313_v39  ;;  %v780_v57 = vadd.f32 %v314_v53, %v84_v35 }
  0xc9   :  { %v355_v58 = vmul.f32 0.044715, %v327_v50  ;;  %v385_v60 = vmul.f32 0.7978846, %v377_v54  ;;  %v357_v0 = vmul.f32 0.044715, %v778_v56 }
  0xca   :  { %v356_v59 = vmul.f32 0.044715, %v341_v51  ;;  %v386_v61 = vmul.f32 0.7978846, %v378_v55  ;;  %v358_v1 = vmul.f32 0.044715, %v780_v57 }
  0xcb   :  { %v363_v62 = vmul.f32 %v355_v58, %v327_v50  ;;  %611 = vtanh.f32 %v385_v60  ;;  %v365_v4 = vmul.f32 %v357_v0, %v778_v56  ;;  %v347_v38 = vmul.f32 0.5, %v327_v50 }
  0xcc   :  { %v364_v63 = vmul.f32 %v356_v59, %v341_v51  ;;  %613 = vtanh.f32 %v386_v61  ;;  %v366_v5 = vmul.f32 %v358_v1, %v780_v57  ;;  %v349_v47 = vmul.f32 0.5, %v778_v56 }
  0xcd   :  { %v371_v2 = vmul.f32 %v363_v62, %v327_v50  ;;  %v373_v10 = vmul.f32 %v365_v4, %v778_v56  ;;  %v350_v52 = vmul.f32 0.5, %v780_v57 }
  0xce   :  { %v372_v3 = vmul.f32 %v364_v63, %v341_v51  ;;  %v328_v6 = vpop.f32.mrf.mxu2  ;;  %v374_v12 = vmul.f32 %v366_v5, %v780_v57 }
  0xcf   :  { %v342_v7 = vpop.f32.mrf.mxu3  ;;  %v379_v8 = vadd.f32 %v371_v2, %v327_v50  ;;  %v329_v11 = vadd.f32 %v328_v6, %v85_v42  ;;  %v381_v16 = vadd.f32 %v373_v10, %v778_v56  ;;  %v348_v42 = vmul.f32 0.5, %v341_v51 }
  0xd0   :  { %v380_v9 = vadd.f32 %v372_v3, %v341_v51  ;;  %v343_v13 = vadd.f32 %v342_v7, %v86_v43  ;;  %v382_v19 = vadd.f32 %v374_v12, %v780_v57 }
  0xd1   :  { %v387_v14 = vmul.f32 0.7978846, %v379_v8  ;;  %v612_v17 = vpop.eup %611  ;;  %v359_v20 = vmul.f32 0.044715, %v329_v11  ;;  %v389_v25 = vmul.f32 0.7978846, %v381_v16 }
  0xd2   :  { %v388_v15 = vmul.f32 0.7978846, %v380_v9  ;;  %v360_v21 = vmul.f32 0.044715, %v343_v13  ;;  %v614_v22 = vpop.eup %613  ;;  %v401_v23 = vadd.f32 1.0, %v612_v17  ;;  %v351_v56 = vmul.f32 0.5, %v329_v11 }
  0xd3   :  { %615 = vtanh.f32 %v387_v14  ;;  %v402_v26 = vadd.f32 1.0, %v614_v22  ;;  %v390_v27 = vmul.f32 0.7978846, %v382_v19  ;;  %v367_v28 = vmul.f32 %v359_v20, %v329_v11 }
  0xd4   :  { %617 = vtanh.f32 %v388_v15  ;;  %v409_v29 = vmul.f32 %v401_v23, %v345_v18  ;;  %v368_v30 = vmul.f32 %v360_v21, %v343_v13  ;;  %v352_v59 = vmul.f32 0.5, %v343_v13 }
  0xd5   :  { %619 = vtanh.f32 %v389_v25  ;;  %v410_v31 = vmul.f32 %v402_v26, %v346_v24  ;;  %v375_v32 = vmul.f32 %v367_v28, %v329_v11 }
  0xd6   :  { %621 = vtanh.f32 %v390_v27  ;;  %417 = vst [vmem:[#allocation2] sm:$0xff] %v409_v29  ;;  %v376_v33 = vmul.f32 %v368_v30, %v343_v13 }
  0xd7   :  { %418 = vst [vmem:[#allocation2 + $0x8] sm:$0xff] %v410_v31  ;;  %v383_v34 = vadd.f32 %v375_v32, %v329_v11 }
  0xd8   :  { %v384_v36 = vadd.f32 %v376_v33, %v343_v13 }
  0xd9   :  { %v616_v35 = vpop.eup %615  ;;  %v391_v40 = vmul.f32 0.7978846, %v383_v34 }
  0xda   :  { %v618_v37 = vpop.eup %617  ;;  %v403_v39 = vadd.f32 1.0, %v616_v35  ;;  %v392_v44 = vmul.f32 0.7978846, %v384_v36 }
  0xdb   :  { %v620_v41 = vpop.eup %619  ;;  %v404_v43 = vadd.f32 1.0, %v618_v37  ;;  %623 = vtanh.f32 %v391_v40 }
  0xdc   :  { %v622_v45 = vpop.eup %621  ;;  %v411_v46 = vmul.f32 %v403_v39, %v347_v38  ;;  %v405_v48 = vadd.f32 1.0, %v620_v41  ;;  %625 = vtanh.f32 %v392_v44 }
  0xdd   :  { %v412_v49 = vmul.f32 %v404_v43, %v348_v42  ;;  %v406_v53 = vadd.f32 1.0, %v622_v45 }
  0xde   :  { %419 = vst [vmem:[#allocation2 + $0x10] sm:$0xff] %v411_v46  ;;  %v413_v54 = vmul.f32 %v405_v48, %v349_v47 }
  0xdf   :  { %420 = vst [vmem:[#allocation2 + $0x18] sm:$0xff] %v412_v49  ;;  %v414_v50 = vmul.f32 %v406_v53, %v350_v52 }
  0xe0   :  { %421 = vst [vmem:[#allocation2 + $0x20] sm:$0xff] %v413_v54 }
  0xe1   :  { %422 = vst [vmem:[#allocation2 + $0x28] sm:$0xff] %v414_v50  ;;  %v624_v51 = vpop.eup %623 }
  0xe2   :  { %v626_v55 = vpop.eup %625  ;;  %v407_v58 = vadd.f32 1.0, %v624_v51 }
  0xe3   :  { %v408_v57 = vadd.f32 1.0, %v626_v55 }
  0xe4   :  { %v415_v60 = vmul.f32 %v407_v58, %v351_v56 }
  0xe5   :  { %v416_v61 = vmul.f32 %v408_v57, %v352_v59 }
  0xe6   :  { %423 = vst [vmem:[#allocation2 + $0x30] sm:$0xff] %v415_v60 }
  0xe7   :  { %424 = vst [vmem:[#allocation2 + $0x38] sm:$0xff] %v416_v61 }
  0xe8   :  { %437 = dma.vmem_to_hbm [thread:$0]  %s430_s1, 1024, %s432_s27, [#allocation3], %s654_s28, %s654_s28, %s655_s29  }
  0xe9   :  { %651 = dma.done.wait [#allocation3], 1024  }
  0xea   :  { %652 = vsyncadd [#allocation3], 4294966272 }
  0xeb   :  { %442 = vsyncpa [#allocation3], 1 }

</bundles_post_ra>
